<compile_context>
chip_gen: v7x
topology: tpu7x:2x2x1
jax: 0.10.0
libtpu: 0.0.40
codegen_flags: <defaults>
</compile_context>

<pallas_src>
import functools
import math

import jax
import jax.numpy as jnp
from jax.experimental import pallas as pl
from jax.experimental.pallas import tpu as pltpu


def _conv_lrelu_taps_kernel(x_ref, w_ref, o_ref, acc_ref, *, K, W, TH, slope):
    """Per-tap accumulating matmuls (small / moderate C_out).

    x_ref  : (C_in_pad, win_len)      halo window, image rows flattened onto lanes
    w_ref  : (K*K, C_out, C_in_pad)   scale-folded per-tap weight matrices
    o_ref  : (C_out, TH*W)            output row tile
    acc_ref: (C_out, TH*W) f32        VMEM accumulator
    """
    THW = TH * W
    p = K // 2
    # Lane's column within its image row; used to zero taps that wrapped into
    # the adjacent row (exactly where F.conv2d's zero width-padding lands).
    col = jax.lax.broadcasted_iota(jnp.int32, (1, THW), 1) % W
    for kh in range(K):
        for kw in range(K):
            t = kh * K + kw
            tap = x_ref[:, pl.ds(kh * W + kw, THW)]              # (C_in_pad, THW)
            if kw != p:                                          # center tap never wraps
                valid = (col >= (p - kw)) & (col < (W + p - kw))
                tap = jnp.where(valid, tap, jnp.zeros_like(tap))  # select, not *mask
            part = jnp.dot(w_ref[t], tap, preferred_element_type=jnp.float32)
            if t == 0:
                acc_ref[...] = part
            else:
                acc_ref[...] += part
    y = acc_ref[...]
    o_ref[...] = jnp.where(y >= 0, y, slope * y).astype(o_ref.dtype)   # LeakyReLU(0.2)


def _conv_lrelu_im2col_kernel(x_ref, w_ref, o_ref, col_ref, *, K, C_in_pad, W, TH, slope):
    """Single deep-contraction matmul via in-VMEM im2col (large C_out only)."""
    THW = TH * W
    p = K // 2
    col = jax.lax.broadcasted_iota(jnp.int32, (1, THW), 1) % W
    for kh in range(K):
        for kw in range(K):
            t = kh * K + kw
            tap = x_ref[:, pl.ds(kh * W + kw, THW)]
            if kw != p:
                valid = (col >= (p - kw)) & (col < (W + p - kw))
                tap = jnp.where(valid, tap, jnp.zeros_like(tap))
            col_ref[pl.ds(t * C_in_pad, C_in_pad), :] = tap       # sublane-aligned store
    y = jnp.dot(w_ref[...], col_ref[...], preferred_element_type=jnp.float32)
    o_ref[...] = jnp.where(y >= 0, y, slope * y).astype(o_ref.dtype)


def _vmem_budget_bytes():
    phys = 64 * 2**20                      # assume the smallest (v7x) if query fails
    try:
        info = pltpu.get_tpu_info()
        phys = int(getattr(info, "vmem_capacity_bytes", phys))
    except Exception:
        pass
    return (3 * phys) // 4                 # ~48 MiB on v7x, ~96 MiB on v5e/v6e


def _pick_row_tile(H, W, B, footprint_fn, budget):
    cands = [th for th in range(1, H + 1) if H % th == 0 and (th * W) % 128 == 0]
    if not cands:
        # TODO(synk): fold multiple rows/images into one lane-dense tile when no
        # TH gives TH*W % 128 == 0 (falls back to full-image, masked stores).
        return H
    fit = [th for th in cands if footprint_fn(th) <= budget] or [min(cands)]
    if B < 2:
        # v7x has 2 TensorCores: prefer >= 2 parallel grid steps at tiny batch.
        multi = [th for th in fit if H // th >= 2]
        if multi:
            return max(multi)
    return max(fit)


def conv_layer_forward(x, weight, *, negative_slope=0.2, compute_dtype=jnp.bfloat16):
    """ConvLayer forward (default config). x: (B,C_in,H,W), weight: (C_out,C_in,K,K).

    compute_dtype is the MXU input dtype (bf16 default: ~2x MXU rate, half the DMA
    bytes; accumulation is always f32).  Pass jnp.float32 for bit-tighter results.
    """
    B, C_in, H, W = x.shape
    C_out, C_in_w, K, K2 = weight.shape
    assert C_in_w == C_in and K == K2
    assert K % 2 == 1, "padding=K//2 only matches F.conv2d output shape for odd K"
    p = K // 2
    scale = 1.0 / math.sqrt(C_in * K * K)          # EqualConv2d scale (original C_in)

    cdt = jnp.dtype(compute_dtype)
    isz = cdt.itemsize
    out_isz = jnp.dtype(x.dtype).itemsize
    sub = 8 * (4 // isz)                           # sublane multiple: 8 f32 / 16 bf16
    C_in_pad = ((C_in + sub - 1) // sub) * sub
    KKC = K * K * C_in_pad

    # The im2col copy saturates the vector-store slot unless C_out is large;
    # use per-tap accumulating dots otherwise.
    use_im2col = C_out >= (128 if isz <= 2 else 32)

    def footprint(th):
        thw = th * W
        wl = (th + K - 1) * W + (K - 1)
        f = 2 * C_in_pad * wl * isz                # x halo block, double-buffered
        f += 2 * C_out * thw * out_isz             # output block, double-buffered
        f += 2 * K * K * C_out * C_in_pad * isz    # weights (constant block index)
        f += KKC * thw * isz if use_im2col else C_out * thw * 4
        return f

    budget = _vmem_budget_bytes()
    TH = _pick_row_tile(H, W, B, footprint, budget)
    R = H // TH
    THW = TH * W
    win_len = (TH + K - 1) * W + (K - 1)

    # --- cheap wrapper-side layout: height pad + lane slack, no K*K blowup ---
    # TODO(synk): the overlapping-halo stack duplicates ~(K-1)/TH of the input;
    # a manual-DMA (pl.ANY) halo fetch would remove it — kept BlockSpec-pipelined
    # here for robustness.
    xp = jnp.pad(x, ((0, 0), (0, C_in_pad - C_in), (p, p), (0, 0)))
    xflat = xp.reshape(B, C_in_pad, (H + 2 * p) * W)
    xflat = jnp.pad(xflat, ((0, 0), (0, 0), (p, p)))
    x_tiles = jnp.stack(
        [xflat[:, :, r * THW: r * THW + win_len] for r in range(R)], axis=1
    ).astype(cdt)                                                  # (B, R, C_in_pad, win_len)

    w_pad = jnp.pad(weight.astype(jnp.float32) * scale,
                    ((0, 0), (0, C_in_pad - C_in), (0, 0), (0, 0)))

    vmem_limit = int(min(budget, max(32 * 2**20, 2 * footprint(TH) + (8 << 20))))

    if use_im2col:
        w_arg = jnp.transpose(w_pad, (0, 2, 3, 1)).reshape(C_out, KKC).astype(cdt)
        w_spec = pl.BlockSpec((C_out, KKC), lambda b, r: (0, 0))
        scratch = [pltpu.VMEM((KKC, THW), cdt)]
        kernel = functools.partial(_conv_lrelu_im2col_kernel, K=K, C_in_pad=C_in_pad,
                                   W=W, TH=TH, slope=negative_slope)
    else:
        w_arg = jnp.transpose(w_pad, (2, 3, 0, 1)).reshape(K * K, C_out, C_in_pad).astype(cdt)
        w_spec = pl.BlockSpec((K * K, C_out, C_in_pad), lambda b, r: (0, 0, 0))
        scratch = [pltpu.VMEM((C_out, THW), jnp.float32)]
        kernel = functools.partial(_conv_lrelu_taps_kernel, K=K,
                                   W=W, TH=TH, slope=negative_slope)

    out = pl.pallas_call(
        kernel,
        out_shape=jax.ShapeDtypeStruct((B, C_out, H * W), x.dtype),
        grid_spec=pltpu.PrefetchScalarGridSpec(
            num_scalar_prefetch=0,
            grid=(B, R),
            in_specs=[
                pl.BlockSpec((None, None, C_in_pad, win_len), lambda b, r: (b, r, 0, 0)),
                w_spec,   # constant block index -> DMA elided after the first step
            ],
            out_specs=pl.BlockSpec((None, C_out, THW), lambda b, r: (b, 0, r)),
            scratch_shapes=scratch,
        ),
        compiler_params=pltpu.CompilerParams(
            dimension_semantics=("parallel", "parallel"),
            vmem_limit_bytes=vmem_limit,
        ),
    )(x_tiles, w_arg)

    y = out.reshape(B, C_out, H, W)
    noises = jnp.zeros((0,), dtype=x.dtype)   # mirrors torch.Tensor([]) for 'none' injection
    return y, noises


if __name__ == "__main__":
    key = jax.random.PRNGKey(0)
    k_x, k_w, k_x2, k_w2 = jax.random.split(key, 4)

    def reference(x, weight, K):
        pad = K // 2
        scale = 1.0 / math.sqrt(x.shape[1] * K * K)
        ref = jax.lax.conv_general_dilated(
            x, weight * scale, window_strides=(1, 1),
            padding=((pad, pad), (pad, pad)),
            dimension_numbers=("NCHW", "OIHW", "NCHW"),
            precision=jax.lax.Precision.HIGHEST)
        return jnp.where(ref >= 0, ref, 0.2 * ref)

    # --- default-config ConvLayer at small shapes: per-tap MXU path ---
    B, C_in, C_out, H, W, K = 2, 4, 8, 16, 16, 3
    x = jax.random.normal(k_x, (B, C_in, H, W), dtype=jnp.float32)
    weight = jax.random.normal(k_w, (C_out, C_in, K, K), dtype=jnp.float32)
    ref = reference(x, weight, K)

    # f32 compute path: tight check.
    y32, noises = conv_layer_forward(x, weight, compute_dtype=jnp.float32)
    y32 = jax.block_until_ready(y32)
    assert y32.shape == (B, C_out, H, W)
    assert noises.shape == (0,)
    assert jnp.allclose(y32, ref, atol=2e-4, rtol=2e-4), "f32 mismatch vs reference conv"

    # bf16 compute path (default): inputs quantized before the MXU -> relaxed tolerance.
    ybf, _ = conv_layer_forward(x, weight)
    ybf = jax.block_until_ready(ybf)
    assert jnp.allclose(ybf, ref, atol=1e-1, rtol=1e-1), "bf16 mismatch vs reference conv"

    # Larger C_out: exercises the deep-contraction (im2col) path and R>=2 tiling at B=1.
    B2, C2_out = 1, 64
    x2 = jax.random.normal(k_x2, (B2, C_in, H, W), dtype=jnp.float32)
    w2 = jax.random.normal(k_w2, (C2_out, C_in, K, K), dtype=jnp.float32)
    y2, _ = conv_layer_forward(x2, w2, compute_dtype=jnp.float32)
    y2 = jax.block_until_ready(y2)
    ref2 = reference(x2, w2, K)
    assert jnp.allclose(y2, ref2, atol=2e-4, rtol=2e-4), "im2col path mismatch vs reference"

    print("KERNEL_OK")
</pallas_src>

<mosaic_0001>
module attributes {stable_mosaic.version = 11 : i64} {
  func.func @_conv_lrelu_taps_kernel(%arg0: i32, %arg1: i32, %arg2: memref<1x1x8x290xf32, #tpu.memory_space<vmem>>, %arg3: memref<9x8x8xf32, #tpu.memory_space<vmem>>, %arg4: memref<1x8x256xf32, #tpu.memory_space<vmem>>, %arg5: memref<8x256xf32, #tpu.memory_space<vmem>>) attributes {dimension_semantics = [#tpu.dimension_semantics<parallel>, #tpu.dimension_semantics<parallel>], iteration_bounds = array<i64: 2, 1>, scalar_prefetch = 0 : i64, scratch_operands = 1 : i64, tpu.core_type = #tpu.core_type<tc>, window_params = [{transform_indices = @transform_0, window_bounds = array<i64: 1, 1, 8, 290>}, {pipeline_mode = #tpu.pipeline_mode<synchronous>, transform_indices = @transform_1, window_bounds = array<i64: 9, 8, 8>}, {transform_indices = @transform_2, window_bounds = array<i64: 1, 8, 256>}]} {
    %0 = tpu.iota {dimensions = array<i32: 1>} : vector<1x256xi32>
    %c16_i32 = arith.constant 16 : i32
    %c0_i32 = arith.constant 0 : i32
    %1 = arith.cmpi eq, %c16_i32, %c0_i32 : i32
    %c1_i32 = arith.constant 1 : i32
    %2 = arith.select %1, %c1_i32, %c16_i32 : i32
    %3 = vector.broadcast %2 : i32 to vector<1x256xi32>
    %4 = arith.remsi %0, %3 : vector<1x256xi32>
    %c0_i32_0 = arith.constant 0 : i32
    %5 = vector.broadcast %c0_i32_0 : i32 to vector<1x256xi32>
    %6 = arith.cmpi ne, %4, %5 : vector<1x256xi32>
    %c0_i32_1 = arith.constant 0 : i32
    %7 = vector.broadcast %c0_i32_1 : i32 to vector<1x256xi32>
    %8 = arith.cmpi slt, %4, %7 : vector<1x256xi32>
    %c0_i32_2 = arith.constant 0 : i32
    %9 = arith.cmpi slt, %2, %c0_i32_2 : i32
    %10 = vector.broadcast %9 : i1 to vector<1x256xi1>
    %11 = vector.broadcast %10 : vector<1x256xi1> to vector<1x256xi1>
    %12 = arith.xori %8, %11 : vector<1x256xi1>
    %13 = arith.andi %12, %6 : vector<1x256xi1>
    %14 = vector.broadcast %2 : i32 to vector<1x256xi32>
    %15 = arith.addi %4, %14 : vector<1x256xi32>
    %16 = arith.select %13, %15, %4 : vector<1x256xi1>, vector<1x256xi32>
    %c0 = arith.constant 0 : index
    %c0_3 = arith.constant 0 : index
    %c0_4 = arith.constant 0 : index
    %c0_5 = arith.constant 0 : index
    %17 = vector.load %arg2[%c0, %c0_3, %c0_4, %c0_5] : memref<1x1x8x290xf32, #tpu.memory_space<vmem>>, vector<1x1x8x256xf32>
    %18 = vector.shape_cast %17 : vector<1x1x8x256xf32> to vector<8x256xf32>
    %c1_i32_6 = arith.constant 1 : i32
    %19 = vector.broadcast %c1_i32_6 : i32 to vector<1x256xi32>
    %20 = arith.cmpi sge, %16, %19 : vector<1x256xi32>
    %c17_i32 = arith.constant 17 : i32
    %21 = vector.broadcast %c17_i32 : i32 to vector<1x256xi32>
    %22 = arith.cmpi slt, %16, %21 : vector<1x256xi32>
    %23 = arith.andi %20, %22 : vector<1x256xi1>
    %cst = arith.constant 0.000000e+00 : f32
    %24 = vector.broadcast %cst : f32 to vector<8x256xf32>
    %25 = vector.shape_cast %23 : vector<1x256xi1> to vector<1x256xi1>
    %26 = vector.broadcast %25 : vector<1x256xi1> to vector<8x256xi1>
    %27 = arith.select %26, %18, %24 : vector<8x256xi1>, vector<8x256xf32>
    %c0_7 = arith.constant 0 : index
    %c0_8 = arith.constant 0 : index
    %c0_9 = arith.constant 0 : index
    %28 = vector.load %arg3[%c0_7, %c0_8, %c0_9] : memref<9x8x8xf32, #tpu.memory_space<vmem>>, vector<1x8x8xf32>
    %29 = vector.shape_cast %28 : vector<1x8x8xf32> to vector<8x8xf32>
    %cst_10 = arith.constant dense<0.000000e+00> : vector<8x256xf32>
    %30 = tpu.matmul %29, %27, %cst_10 {dimension_numbers = #tpu.dot_dimension_numbers<[1], [0], [0], [1], [0, 0, 1, 1], [], []>} : vector<8x8xf32>, vector<8x256xf32>, vector<8x256xf32> -> vector<8x256xf32>
    %c0_11 = arith.constant 0 : index
    %c0_12 = arith.constant 0 : index
    %31 = vector.load %arg5[%c0_11, %c0_12] : memref<8x256xf32, #tpu.memory_space<vmem>>, vector<8x256xf32>
    tpu.vector_store %arg5[%c0_11, %c0_12], %30 {strides = array<i32>} : memref<8x256xf32, #tpu.memory_space<vmem>>, vector<8x256xf32>,
    %c0_13 = arith.constant 0 : index
    %c0_14 = arith.constant 0 : index
    %c0_15 = arith.constant 0 : index
    %c1 = arith.constant 1 : index
    %32 = vector.load %arg2[%c0_13, %c0_14, %c0_15, %c1] : memref<1x1x8x290xf32, #tpu.memory_space<vmem>>, vector<1x1x8x256xf32>
    %33 = vector.shape_cast %32 : vector<1x1x8x256xf32> to vector<8x256xf32>
    %c1_16 = arith.constant 1 : index
    %c0_17 = arith.constant 0 : index
    %c0_18 = arith.constant 0 : index
    %34 = vector.load %arg3[%c1_16, %c0_17, %c0_18] : memref<9x8x8xf32, #tpu.memory_space<vmem>>, vector<1x8x8xf32>
    %35 = vector.shape_cast %34 : vector<1x8x8xf32> to vector<8x8xf32>
    %cst_19 = arith.constant dense<0.000000e+00> : vector<8x256xf32>
    %36 = tpu.matmul %35, %33, %cst_19 {dimension_numbers = #tpu.dot_dimension_numbers<[1], [0], [0], [1], [0, 0, 1, 1], [], []>} : vector<8x8xf32>, vector<8x256xf32>, vector<8x256xf32> -> vector<8x256xf32>
    %c0_20 = arith.constant 0 : index
    %c0_21 = arith.constant 0 : index
    %37 = vector.load %arg5[%c0_20, %c0_21] : memref<8x256xf32, #tpu.memory_space<vmem>>, vector<8x256xf32>
    %38 = arith.addf %37, %36 : vector<8x256xf32>
    %c0_22 = arith.constant 0 : index
    %c0_23 = arith.constant 0 : index
    %39 = vector.load %arg5[%c0_22, %c0_23] : memref<8x256xf32, #tpu.memory_space<vmem>>, vector<8x256xf32>
    tpu.vector_store %arg5[%c0_22, %c0_23], %38 {strides = array<i32>} : memref<8x256xf32, #tpu.memory_space<vmem>>, vector<8x256xf32>,
    %c0_24 = arith.constant 0 : index
    %c0_25 = arith.constant 0 : index
    %c0_26 = arith.constant 0 : index
    %c2 = arith.constant 2 : index
    %40 = vector.load %arg2[%c0_24, %c0_25, %c0_26, %c2] : memref<1x1x8x290xf32, #tpu.memory_space<vmem>>, vector<1x1x8x256xf32>
    %41 = vector.shape_cast %40 : vector<1x1x8x256xf32> to vector<8x256xf32>
    %c-1_i32 = arith.constant -1 : i32
    %42 = vector.broadcast %c-1_i32 : i32 to vector<1x256xi32>
    %43 = arith.cmpi sge, %16, %42 : vector<1x256xi32>
    %c15_i32 = arith.constant 15 : i32
    %44 = vector.broadcast %c15_i32 : i32 to vector<1x256xi32>
    %45 = arith.cmpi slt, %16, %44 : vector<1x256xi32>
    %46 = arith.andi %43, %45 : vector<1x256xi1>
    %cst_27 = arith.constant 0.000000e+00 : f32
    %47 = vector.broadcast %cst_27 : f32 to vector<8x256xf32>
    %48 = vector.shape_cast %46 : vector<1x256xi1> to vector<1x256xi1>
    %49 = vector.broadcast %48 : vector<1x256xi1> to vector<8x256xi1>
    %50 = arith.select %49, %41, %47 : vector<8x256xi1>, vector<8x256xf32>
    %c2_28 = arith.constant 2 : index
    %c0_29 = arith.constant 0 : index
    %c0_30 = arith.constant 0 : index
    %51 = vector.load %arg3[%c2_28, %c0_29, %c0_30] : memref<9x8x8xf32, #tpu.memory_space<vmem>>, vector<1x8x8xf32>
    %52 = vector.shape_cast %51 : vector<1x8x8xf32> to vector<8x8xf32>
    %cst_31 = arith.constant dense<0.000000e+00> : vector<8x256xf32>
    %53 = tpu.matmul %52, %50, %cst_31 {dimension_numbers = #tpu.dot_dimension_numbers<[1], [0], [0], [1], [0, 0, 1, 1], [], []>} : vector<8x8xf32>, vector<8x256xf32>, vector<8x256xf32> -> vector<8x256xf32>
    %c0_32 = arith.constant 0 : index
    %c0_33 = arith.constant 0 : index
    %54 = vector.load %arg5[%c0_32, %c0_33] : memref<8x256xf32, #tpu.memory_space<vmem>>, vector<8x256xf32>
    %55 = arith.addf %54, %53 : vector<8x256xf32>
    %c0_34 = arith.constant 0 : index
    %c0_35 = arith.constant 0 : index
    %56 = vector.load %arg5[%c0_34, %c0_35] : memref<8x256xf32, #tpu.memory_space<vmem>>, vector<8x256xf32>
    tpu.vector_store %arg5[%c0_34, %c0_35], %55 {strides = array<i32>} : memref<8x256xf32, #tpu.memory_space<vmem>>, vector<8x256xf32>,
    %c0_36 = arith.constant 0 : index
    %c0_37 = arith.constant 0 : index
    %c0_38 = arith.constant 0 : index
    %c16 = arith.constant 16 : index
    %57 = vector.load %arg2[%c0_36, %c0_37, %c0_38, %c16] : memref<1x1x8x290xf32, #tpu.memory_space<vmem>>, vector<1x1x8x256xf32>
    %58 = vector.shape_cast %57 : vector<1x1x8x256xf32> to vector<8x256xf32>
    %c1_i32_39 = arith.constant 1 : i32
    %59 = vector.broadcast %c1_i32_39 : i32 to vector<1x256xi32>
    %60 = arith.cmpi sge, %16, %59 : vector<1x256xi32>
    %c17_i32_40 = arith.constant 17 : i32
    %61 = vector.broadcast %c17_i32_40 : i32 to vector<1x256xi32>
    %62 = arith.cmpi slt, %16, %61 : vector<1x256xi32>
    %63 = arith.andi %60, %62 : vector<1x256xi1>
    %cst_41 = arith.constant 0.000000e+00 : f32
    %64 = vector.broadcast %cst_41 : f32 to vector<8x256xf32>
    %65 = vector.shape_cast %63 : vector<1x256xi1> to vector<1x256xi1>
    %66 = vector.broadcast %65 : vector<1x256xi1> to vector<8x256xi1>
    %67 = arith.select %66, %58, %64 : vector<8x256xi1>, vector<8x256xf32>
    %c3 = arith.constant 3 : index
    %c0_42 = arith.constant 0 : index
    %c0_43 = arith.constant 0 : index
    %68 = vector.load %arg3[%c3, %c0_42, %c0_43] : memref<9x8x8xf32, #tpu.memory_space<vmem>>, vector<1x8x8xf32>
    %69 = vector.shape_cast %68 : vector<1x8x8xf32> to vector<8x8xf32>
    %cst_44 = arith.constant dense<0.000000e+00> : vector<8x256xf32>
    %70 = tpu.matmul %69, %67, %cst_44 {dimension_numbers = #tpu.dot_dimension_numbers<[1], [0], [0], [1], [0, 0, 1, 1], [], []>} : vector<8x8xf32>, vector<8x256xf32>, vector<8x256xf32> -> vector<8x256xf32>
    %c0_45 = arith.constant 0 : index
    %c0_46 = arith.constant 0 : index
    %71 = vector.load %arg5[%c0_45, %c0_46] : memref<8x256xf32, #tpu.memory_space<vmem>>, vector<8x256xf32>
    %72 = arith.addf %71, %70 : vector<8x256xf32>
    %c0_47 = arith.constant 0 : index
    %c0_48 = arith.constant 0 : index
    %73 = vector.load %arg5[%c0_47, %c0_48] : memref<8x256xf32, #tpu.memory_space<vmem>>, vector<8x256xf32>
    tpu.vector_store %arg5[%c0_47, %c0_48], %72 {strides = array<i32>} : memref<8x256xf32, #tpu.memory_space<vmem>>, vector<8x256xf32>,
    %c0_49 = arith.constant 0 : index
    %c0_50 = arith.constant 0 : index
    %c0_51 = arith.constant 0 : index
    %c17 = arith.constant 17 : index
    %74 = vector.load %arg2[%c0_49, %c0_50, %c0_51, %c17] : memref<1x1x8x290xf32, #tpu.memory_space<vmem>>, vector<1x1x8x256xf32>
    %75 = vector.shape_cast %74 : vector<1x1x8x256xf32> to vector<8x256xf32>
    %c4 = arith.constant 4 : index
    %c0_52 = arith.constant 0 : index
    %c0_53 = arith.constant 0 : index
    %76 = vector.load %arg3[%c4, %c0_52, %c0_53] : memref<9x8x8xf32, #tpu.memory_space<vmem>>, vector<1x8x8xf32>
    %77 = vector.shape_cast %76 : vector<1x8x8xf32> to vector<8x8xf32>
    %cst_54 = arith.constant dense<0.000000e+00> : vector<8x256xf32>
    %78 = tpu.matmul %77, %75, %cst_54 {dimension_numbers = #tpu.dot_dimension_numbers<[1], [0], [0], [1], [0, 0, 1, 1], [], []>} : vector<8x8xf32>, vector<8x256xf32>, vector<8x256xf32> -> vector<8x256xf32>
    %c0_55 = arith.constant 0 : index
    %c0_56 = arith.constant 0 : index
    %79 = vector.load %arg5[%c0_55, %c0_56] : memref<8x256xf32, #tpu.memory_space<vmem>>, vector<8x256xf32>
    %80 = arith.addf %79, %78 : vector<8x256xf32>
    %c0_57 = arith.constant 0 : index
    %c0_58 = arith.constant 0 : index
    %81 = vector.load %arg5[%c0_57, %c0_58] : memref<8x256xf32, #tpu.memory_space<vmem>>, vector<8x256xf32>
    tpu.vector_store %arg5[%c0_57, %c0_58], %80 {strides = array<i32>} : memref<8x256xf32, #tpu.memory_space<vmem>>, vector<8x256xf32>,
    %c0_59 = arith.constant 0 : index
    %c0_60 = arith.constant 0 : index
    %c0_61 = arith.constant 0 : index
    %c18 = arith.constant 18 : index
    %82 = vector.load %arg2[%c0_59, %c0_60, %c0_61, %c18] : memref<1x1x8x290xf32, #tpu.memory_space<vmem>>, vector<1x1x8x256xf32>
    %83 = vector.shape_cast %82 : vector<1x1x8x256xf32> to vector<8x256xf32>
    %c-1_i32_62 = arith.constant -1 : i32
    %84 = vector.broadcast %c-1_i32_62 : i32 to vector<1x256xi32>
    %85 = arith.cmpi sge, %16, %84 : vector<1x256xi32>
    %c15_i32_63 = arith.constant 15 : i32
    %86 = vector.broadcast %c15_i32_63 : i32 to vector<1x256xi32>
    %87 = arith.cmpi slt, %16, %86 : vector<1x256xi32>
    %88 = arith.andi %85, %87 : vector<1x256xi1>
    %cst_64 = arith.constant 0.000000e+00 : f32
    %89 = vector.broadcast %cst_64 : f32 to vector<8x256xf32>
    %90 = vector.shape_cast %88 : vector<1x256xi1> to vector<1x256xi1>
    %91 = vector.broadcast %90 : vector<1x256xi1> to vector<8x256xi1>
    %92 = arith.select %91, %83, %89 : vector<8x256xi1>, vector<8x256xf32>
    %c5 = arith.constant 5 : index
    %c0_65 = arith.constant 0 : index
    %c0_66 = arith.constant 0 : index
    %93 = vector.load %arg3[%c5, %c0_65, %c0_66] : memref<9x8x8xf32, #tpu.memory_space<vmem>>, vector<1x8x8xf32>
    %94 = vector.shape_cast %93 : vector<1x8x8xf32> to vector<8x8xf32>
    %cst_67 = arith.constant dense<0.000000e+00> : vector<8x256xf32>
    %95 = tpu.matmul %94, %92, %cst_67 {dimension_numbers = #tpu.dot_dimension_numbers<[1], [0], [0], [1], [0, 0, 1, 1], [], []>} : vector<8x8xf32>, vector<8x256xf32>, vector<8x256xf32> -> vector<8x256xf32>
    %c0_68 = arith.constant 0 : index
    %c0_69 = arith.constant 0 : index
    %96 = vector.load %arg5[%c0_68, %c0_69] : memref<8x256xf32, #tpu.memory_space<vmem>>, vector<8x256xf32>
    %97 = arith.addf %96, %95 : vector<8x256xf32>
    %c0_70 = arith.constant 0 : index
    %c0_71 = arith.constant 0 : index
    %98 = vector.load %arg5[%c0_70, %c0_71] : memref<8x256xf32, #tpu.memory_space<vmem>>, vector<8x256xf32>
    tpu.vector_store %arg5[%c0_70, %c0_71], %97 {strides = array<i32>} : memref<8x256xf32, #tpu.memory_space<vmem>>, vector<8x256xf32>,
    %c0_72 = arith.constant 0 : index
    %c0_73 = arith.constant 0 : index
    %c0_74 = arith.constant 0 : index
    %c32 = arith.constant 32 : index
    %99 = vector.load %arg2[%c0_72, %c0_73, %c0_74, %c32] : memref<1x1x8x290xf32, #tpu.memory_space<vmem>>, vector<1x1x8x256xf32>
    %100 = vector.shape_cast %99 : vector<1x1x8x256xf32> to vector<8x256xf32>
    %c1_i32_75 = arith.constant 1 : i32
    %101 = vector.broadcast %c1_i32_75 : i32 to vector<1x256xi32>
    %102 = arith.cmpi sge, %16, %101 : vector<1x256xi32>
    %c17_i32_76 = arith.constant 17 : i32
    %103 = vector.broadcast %c17_i32_76 : i32 to vector<1x256xi32>
    %104 = arith.cmpi slt, %16, %103 : vector<1x256xi32>
    %105 = arith.andi %102, %104 : vector<1x256xi1>
    %cst_77 = arith.constant 0.000000e+00 : f32
    %106 = vector.broadcast %cst_77 : f32 to vector<8x256xf32>
    %107 = vector.shape_cast %105 : vector<1x256xi1> to vector<1x256xi1>
    %108 = vector.broadcast %107 : vector<1x256xi1> to vector<8x256xi1>
    %109 = arith.select %108, %100, %106 : vector<8x256xi1>, vector<8x256xf32>
    %c6 = arith.constant 6 : index
    %c0_78 = arith.constant 0 : index
    %c0_79 = arith.constant 0 : index
    %110 = vector.load %arg3[%c6, %c0_78, %c0_79] : memref<9x8x8xf32, #tpu.memory_space<vmem>>, vector<1x8x8xf32>
    %111 = vector.shape_cast %110 : vector<1x8x8xf32> to vector<8x8xf32>
    %cst_80 = arith.constant dense<0.000000e+00> : vector<8x256xf32>
    %112 = tpu.matmul %111, %109, %cst_80 {dimension_numbers = #tpu.dot_dimension_numbers<[1], [0], [0], [1], [0, 0, 1, 1], [], []>} : vector<8x8xf32>, vector<8x256xf32>, vector<8x256xf32> -> vector<8x256xf32>
    %c0_81 = arith.constant 0 : index
    %c0_82 = arith.constant 0 : index
    %113 = vector.load %arg5[%c0_81, %c0_82] : memref<8x256xf32, #tpu.memory_space<vmem>>, vector<8x256xf32>
    %114 = arith.addf %113, %112 : vector<8x256xf32>
    %c0_83 = arith.constant 0 : index
    %c0_84 = arith.constant 0 : index
    %115 = vector.load %arg5[%c0_83, %c0_84] : memref<8x256xf32, #tpu.memory_space<vmem>>, vector<8x256xf32>
    tpu.vector_store %arg5[%c0_83, %c0_84], %114 {strides = array<i32>} : memref<8x256xf32, #tpu.memory_space<vmem>>, vector<8x256xf32>,
    %c0_85 = arith.constant 0 : index
    %c0_86 = arith.constant 0 : index
    %c0_87 = arith.constant 0 : index
    %c33 = arith.constant 33 : index
    %116 = vector.load %arg2[%c0_85, %c0_86, %c0_87, %c33] : memref<1x1x8x290xf32, #tpu.memory_space<vmem>>, vector<1x1x8x256xf32>
    %117 = vector.shape_cast %116 : vector<1x1x8x256xf32> to vector<8x256xf32>
    %c7 = arith.constant 7 : index
    %c0_88 = arith.constant 0 : index
    %c0_89 = arith.constant 0 : index
    %118 = vector.load %arg3[%c7, %c0_88, %c0_89] : memref<9x8x8xf32, #tpu.memory_space<vmem>>, vector<1x8x8xf32>
    %119 = vector.shape_cast %118 : vector<1x8x8xf32> to vector<8x8xf32>
    %cst_90 = arith.constant dense<0.000000e+00> : vector<8x256xf32>
    %120 = tpu.matmul %119, %117, %cst_90 {dimension_numbers = #tpu.dot_dimension_numbers<[1], [0], [0], [1], [0, 0, 1, 1], [], []>} : vector<8x8xf32>, vector<8x256xf32>, vector<8x256xf32> -> vector<8x256xf32>
    %c0_91 = arith.constant 0 : index
    %c0_92 = arith.constant 0 : index
    %121 = vector.load %arg5[%c0_91, %c0_92] : memref<8x256xf32, #tpu.memory_space<vmem>>, vector<8x256xf32>
    %122 = arith.addf %121, %120 : vector<8x256xf32>
    %c0_93 = arith.constant 0 : index
    %c0_94 = arith.constant 0 : index
    %123 = vector.load %arg5[%c0_93, %c0_94] : memref<8x256xf32, #tpu.memory_space<vmem>>, vector<8x256xf32>
    tpu.vector_store %arg5[%c0_93, %c0_94], %122 {strides = array<i32>} : memref<8x256xf32, #tpu.memory_space<vmem>>, vector<8x256xf32>,
    %c0_95 = arith.constant 0 : index
    %c0_96 = arith.constant 0 : index
    %c0_97 = arith.constant 0 : index
    %c34 = arith.constant 34 : index
    %124 = vector.load %arg2[%c0_95, %c0_96, %c0_97, %c34] : memref<1x1x8x290xf32, #tpu.memory_space<vmem>>, vector<1x1x8x256xf32>
    %125 = vector.shape_cast %124 : vector<1x1x8x256xf32> to vector<8x256xf32>
    %c-1_i32_98 = arith.constant -1 : i32
    %126 = vector.broadcast %c-1_i32_98 : i32 to vector<1x256xi32>
    %127 = arith.cmpi sge, %16, %126 : vector<1x256xi32>
    %c15_i32_99 = arith.constant 15 : i32
    %128 = vector.broadcast %c15_i32_99 : i32 to vector<1x256xi32>
    %129 = arith.cmpi slt, %16, %128 : vector<1x256xi32>
    %130 = arith.andi %127, %129 : vector<1x256xi1>
    %cst_100 = arith.constant 0.000000e+00 : f32
    %131 = vector.broadcast %cst_100 : f32 to vector<8x256xf32>
    %132 = vector.shape_cast %130 : vector<1x256xi1> to vector<1x256xi1>
    %133 = vector.broadcast %132 : vector<1x256xi1> to vector<8x256xi1>
    %134 = arith.select %133, %125, %131 : vector<8x256xi1>, vector<8x256xf32>
    %c8 = arith.constant 8 : index
    %c0_101 = arith.constant 0 : index
    %c0_102 = arith.constant 0 : index
    %135 = vector.load %arg3[%c8, %c0_101, %c0_102] : memref<9x8x8xf32, #tpu.memory_space<vmem>>, vector<1x8x8xf32>
    %136 = vector.shape_cast %135 : vector<1x8x8xf32> to vector<8x8xf32>
    %cst_103 = arith.constant dense<0.000000e+00> : vector<8x256xf32>
    %137 = tpu.matmul %136, %134, %cst_103 {dimension_numbers = #tpu.dot_dimension_numbers<[1], [0], [0], [1], [0, 0, 1, 1], [], []>} : vector<8x8xf32>, vector<8x256xf32>, vector<8x256xf32> -> vector<8x256xf32>
    %c0_104 = arith.constant 0 : index
    %c0_105 = arith.constant 0 : index
    %138 = vector.load %arg5[%c0_104, %c0_105] : memref<8x256xf32, #tpu.memory_space<vmem>>, vector<8x256xf32>
    %139 = arith.addf %138, %137 : vector<8x256xf32>
    %c0_106 = arith.constant 0 : index
    %c0_107 = arith.constant 0 : index
    %140 = vector.load %arg5[%c0_106, %c0_107] : memref<8x256xf32, #tpu.memory_space<vmem>>, vector<8x256xf32>
    tpu.vector_store %arg5[%c0_106, %c0_107], %139 {strides = array<i32>} : memref<8x256xf32, #tpu.memory_space<vmem>>, vector<8x256xf32>,
    %c0_108 = arith.constant 0 : index
    %c0_109 = arith.constant 0 : index
    %141 = vector.load %arg5[%c0_108, %c0_109] : memref<8x256xf32, #tpu.memory_space<vmem>>, vector<8x256xf32>
    %cst_110 = arith.constant 0.000000e+00 : f32
    %142 = vector.broadcast %cst_110 : f32 to vector<8x256xf32>
    %143 = arith.cmpf oge, %141, %142 : vector<8x256xf32>
    %cst_111 = arith.constant 2.000000e-01 : f32
    %144 = vector.broadcast %cst_111 : f32 to vector<8x256xf32>
    %145 = arith.mulf %144, %141 : vector<8x256xf32>
    %146 = arith.select %143, %141, %145 : vector<8x256xi1>, vector<8x256xf32>
    %c0_112 = arith.constant 0 : index
    %c0_113 = arith.constant 0 : index
    %c0_114 = arith.constant 0 : index
    %147 = vector.load %arg4[%c0_112, %c0_113, %c0_114] : memref<1x8x256xf32, #tpu.memory_space<vmem>>, vector<1x8x256xf32>
    %148 = vector.shape_cast %147 : vector<1x8x256xf32> to vector<8x256xf32>
    %149 = vector.shape_cast %146 : vector<8x256xf32> to vector<1x8x256xf32>
    tpu.vector_store %arg4[%c0_112, %c0_113, %c0_114], %149 {strides = array<i32>} : memref<1x8x256xf32, #tpu.memory_space<vmem>>, vector<1x8x256xf32>,
    return
  }
  func.func @transform_0(%arg0: i32, %arg1: i32) -> (i32, i32, i32, i32) {
    %c0_i32 = arith.constant 0 : i32
    %c0_i32_0 = arith.constant 0 : i32
    %c0_i32_1 = arith.constant 0 : i32
    return %arg0, %arg1, %c0_i32, %c0_i32_0 : i32, i32, i32, i32
  }
  func.func @transform_1(%arg0: i32, %arg1: i32) -> (i32, i32, i32) {
    %c0_i32 = arith.constant 0 : i32
    %c0_i32_0 = arith.constant 0 : i32
    %c0_i32_1 = arith.constant 0 : i32
    %c0_i32_2 = arith.constant 0 : i32
    return %c0_i32, %c0_i32_0, %c0_i32_1 : i32, i32, i32
  }
  func.func @transform_2(%arg0: i32, %arg1: i32) -> (i32, i32, i32) {
    %c0_i32 = arith.constant 0 : i32
    %c0_i32_0 = arith.constant 0 : i32
    return %arg0, %c0_i32, %arg1 : i32, i32, i32
  }
}

</mosaic_0001>

<bundles_post_ra>
// kernel: tpu_custom_call.1
= control target key start
LH: loop header
LB: loop body
LE: loop exit
PB: predicated region body
PF: predicated region fallthrough
CT: control target
= control target key end

     0   :  { %7 = vsyncpa [#allocation4], 0  ;;  %s1643_s0 = inlined_call_operand.vmem [shape: f32[2,1,8,290], index: 0, kind: input, shape index: {}]   ;;  %s1644_s1 = inlined_call_operand.vmem [shape: f32[9,8,8], index: 1, kind: input, shape index: {}]   ;;  %s1645_s2 = inlined_call_operand.hbm [shape: f32[2,8,256], index: 2, kind: output, shape index: {}]  }
   0x1   :  { %9 = vsyncpa [#allocation4 + $0x1], 0  ;;  %s1436_s9 = smov 0   ;;  %s1438_s10 = smov 0  }
   0x2   :  { %s1440_s11 = smov 0   ;;  %s1442_s12 = smov 0  }
   0x3   :  { %s1444_s13 = smov 0   ;;  %s1446_s14 = smov 0  }
   0x4 LB: > { %s1208_s15 = sadd.s32 4294967295, %s1409_s14   ;;  %s1209_s16 = sadd.s32 4294967294, %s1409_s14   ;;  %s1409_s14 = sphi %s1446_s14, %s15_s14   ;;  %s1405_s13 = sphi %s1444_s13, %s1660_s13   ;;  %s1401_s12 = sphi %s1442_s12, %s1659_s12   ;;  %s1397_s11 = sphi %s1440_s11, %s1658_s11   ;;  %s1393_s10 = sphi %s1438_s10, %s1657_s10   ;;  %s1389_s9 = sphi %s1436_s9, %s1656_s9  }
   0x5   : > { %s27_s17 = sadd.s32 1, %s1405_s13  ;;  %s85_s18 = sadd.s32 1, %s1397_s11 }
   0x6   : > { %p29_p0 = scmp.ge.s32.totalorder %s27_s17, 2  ;;  %p95_p1 = scmp.ne.s32.totalorder %s1397_s11, %s1393_s10 }
   0x7   : > { %p96_p2 = scmp.eq.s32.totalorder %s1208_s15, 1  ;;  %p101_p3 = scmp.ne.s32.totalorder %s1393_s10, %s1389_s9 }
   0x8   : > { %s1662_s17 = smov (%p29_p0, %s27_s17), 0  ;;  %p102_p5 = scmp.eq.s32.totalorder %s1209_s16, 1 }
   0x9   : > { %p1476_p4 = por %p96_p2, %p95_p1  ;;  %s80_s20 = ssub.s32 %s1405_s13, %s1662_s17 }
   0xa   : > { %p1212_p6 = scmp.ge.s32.totalorder %s1409_s14, 1  ;;  %p83_p7 = scmp.eq.s32.totalorder %s80_s20, 0 }
   0xb   : > { %p1483_p8 = por %p102_p5, %p101_p3  ;;  %p135_p9 = scmp.lt.s32.totalorder %s1409_s14, 3 }
   0xc   : > { %s1489_s22 = scalar_select %p83_p7, %s1397_s11, %s85_s18  }
   0xd   : > { %p136_p10 = pnand %p1212_p6, %p135_p9 }
   0xe   : > { %p161_p11 = scmp.lt.s32.totalorder (!%p136_p10), %s1401_s12, 1  ;;  %v171_v0 = vlaneseq (!%p136_p10)  ;;  %v1411_v2 = vmov (!%p136_p10), 0.0   ;;  %s1412_s28 = smov (!%p136_p10), 111   ;;  %v212_v11 = vld [vmem:[%s1644_s1] sm:$0xff] (!%p136_p10)  ;;  %vm213_vm2 = vcmask (!%p136_p10), 64512   ;;  %vm615_vm3 = vcmask (!%p136_p10), 908288  }
   0xf   : > { %139 = sbr.rel (%p136_p10) target bundleno = 421 (0x1a5), region = 28  ;;  %687 = vmatprep.mubr.f32.mxu0 (!%p136_p10), %v1411_v2  ;;  %281 = vmatprep.mubr.f32.mxu1 (!%p136_p10), %v1411_v2  ;;  %s1413_s29 = smov (!%p136_p10), 110   ;;  %v1228_v17 = vld [vmem:[%s1644_s1 + $0x20] sm:$0xff] (!%p136_p10)  ;;  %vm712_vm4 = vcmask (!%p136_p10), 900096   ;;  %vm304_vm7 = vcmask (!%p136_p10), 1039360   ;;  %v1230_v28 = vld [vmem:[%s1644_s1 + $0x28] sm:$0xff] (!%p136_p10) }
  0x10   : > { %v1493_v1 = vand.u32 (!%p136_p10), 127, %v171_v0  ;;  %s1414_s4 = smov (!%p136_p10), 127   ;;  %s1415_s5 = smov (!%p136_p10), 96   ;;  %vm813_vm8 = vcmask (!%p136_p10), 785408   ;;  %v1218_v34 = vld [vmem:[%s1644_s1 + $0x8] sm:$0xff] (!%p136_p10)  ;;  %v1234_v37 = vld [vmem:[%s1644_s1 + $0x30] sm:$0xff] (!%p136_p10) }
  0x11   : > { %s1416_s6 = smov (!%p136_p10), 126   ;;  %s1417_s7 = smov (!%p136_p10), 95   ;;  %vm411_vm9 = vcmask (!%p136_p10), 1031168   ;;  %vm916_vm10 = vcmask (!%p136_p10), 777216   ;;  %v1220_v46 = vld [vmem:[%s1644_s1 + $0x10] sm:$0xff] (!%p136_p10)  ;;  %v1238_v47 = vld [vmem:[%s1644_s1 + $0x38] sm:$0xff] (!%p136_p10) }
  0x12   : > { %v173_v3 = vadd.s32 (!%p136_p10), 128, %v1493_v1  ;;  %v178_v4 = vand.u32 (!%p136_p10), 15, %v1493_v1  ;;  %s1418_s8 = smov (!%p136_p10), 112   ;;  %s1419_s15 = smov (!%p136_p10), 94   ;;  %vm512_vm11 = vcmask (!%p136_p10), 916480   ;;  %vm1013_vm12 = vcmask (!%p136_p10), 769024  }
  0x13   : > { %v1224_v58 = vld [vmem:[%s1644_s1 + $0x18] sm:$0xff] (!%p136_p10)  ;;  %v1240_v59 = vld [vmem:[%s1644_s1 + $0x40] sm:$0xff] (!%p136_p10)  ;;  %s1249_s16 = sshll.u32 (!%p136_p10), %s1401_s12, 8 }
  0x14   : > { %v185_v5 = vand.u32 (!%p136_p10), 15, %v173_v3  ;;  %vm1502_vm0 = vcmp.ge.s32.totalorder (!%p136_p10), %v178_v4, 1  ;;  %vm1527_vm6 = vcmp.lt.s32.totalorder (!%p136_p10), %v178_v4, 15  ;;  %s1596_s25 = scalar_lea.hbm (!%p136_p10), %s1645_s2, %s1249_s16 }
  0x16   : > { %s162_s23 = scalar_select %p161_p11, %s1401_s12, 1  ;;  %vm1506_vm1 = vcmp.ge.s32.totalorder %v185_v5, 1  ;;  %vm1522_vm5 = vcmp.lt.s32.totalorder %v185_v5, 15 }
  0x18   : > { %s1266_s24 = smul.u32 24, %s162_s23 }
  0x1a   : > { %s169_s27 = scalar_lea.vmem %s1643_s0, %s1266_s24 }
  0x1b   : > { %v602_v6 = vld [vmem:[%s169_s27 + $0x8] sm:$0xff]  ;;  %v601_v7 = vld [vmem:[%s169_s27] sm:$0xff]  ;;  %v603_v10 = vld [vmem:[%s169_s27 + $0x10] sm:$0xff]  ;;  %s1420_s27 = smov [#allocation3]  }
  0x1c   : > { %611 = vrot.lane.b32.xlu0 %v602_v6, %s1412_s28  ;;  %609 = vrot.lane.b32.xlu1 %v601_v7, %s1412_s28 }
  0x1d   : > { %1215 = vmatprep.subr.msk.mxu1 %vm1506_vm1, %v602_v6 }
  0x1e   : > { %1216 = vmatpush1.msk.msra.mxu1 %vm1502_vm0, %v601_v7 }
  0x1f   : > { %1217 = vmatmul.mubr.msk.f32.vlgmr.msra.gmra.mrb[0].mxu1 %vm213_vm2, %v212_v11 }
  0x20   : > { %613 = vrot.lane.b32.xlu0 %v603_v10, %s1412_s28  ;;  %708 = vrot.lane.b32.xlu1 %v602_v6, %s1413_s29  ;;  %s1335_s28 = sshll.u32 %s1420_s27, 4  ;;  %s1336_s28 = int_to_ptr.vmem [resolvable:$false] %s1335_s28 }
  0x21   : > { %376 = vmatprep.mubr.f32.mxu1 %v1411_v2 }
  0x24   : > { %710 = vrot.lane.b32.xlu0 %v603_v10, %s1413_s29  ;;  %706 = vrot.lane.b32.xlu1 %v601_v7, %s1413_s29  ;;  %s1337_s29 = scalar_lea.vmem %s1336_s28, 512 }
  0x28   : > { %302 = vrot.lane.b32.xlu1 %v603_v10, %s1414_s4  ;;  %300 = vrot.lane.b32.xlu0 %v602_v6, %s1414_s4 }
  0x2c   : > { %811 = vrot.lane.b32.xlu1 %v603_v10, %s1415_s5  ;;  %809 = vrot.lane.b32.xlu0 %v602_v6, %s1415_s5 }
  0x30   : > { %807 = vrot.lane.b32.xlu1 %v601_v7, %s1415_s5  ;;  %298 = vrot.lane.b32.xlu0 %v601_v7, %s1414_s4 }
  0x34   : > { %409 = vrot.lane.b32.xlu1 %v603_v10, %s1416_s6  ;;  %407 = vrot.lane.b32.xlu0 %v602_v6, %s1416_s6 }
  0x38   : > { %914 = vrot.lane.b32.xlu1 %v603_v10, %s1417_s7  ;;  %912 = vrot.lane.b32.xlu0 %v602_v6, %s1417_s7 }
  0x3c   : > { %910 = vrot.lane.b32.xlu1 %v601_v7, %s1417_s7  ;;  %405 = vrot.lane.b32.xlu0 %v601_v7, %s1416_s6 }
  0x40   : > { %510 = vrot.lane.b32.xlu1 %v603_v10, %s1418_s8  ;;  %508 = vrot.lane.b32.xlu0 %v602_v6, %s1418_s8 }
  0x44   : > { %1011 = vrot.lane.b32.xlu1 %v603_v10, %s1419_s15  ;;  %1009 = vrot.lane.b32.xlu0 %v602_v6, %s1419_s15 }
  0x48   : > { %1007 = vrot.lane.b32.xlu1 %v601_v7, %s1419_s15  ;;  %506 = vrot.lane.b32.xlu0 %v601_v7, %s1418_s8  ;;  %s158_s8 = sand.u32 1, %s1393_s10  }
  0x49   : > { %s1213_s15 = sshll.u32 %s158_s8, 4  ;;  %s1113_s12 = scalar_lea.sflag [#allocation4], %s158_s8 }
  0x4a   : > { %s160_s18 = scalar_lea.vmem [#allocation3], %s1213_s15 }
  0x4b   : > { %s1129_s20 = sshll.u32 %s160_s18, 4  ;;  %s1598_s20 = int_to_ptr.vmem [resolvable:$true] %s1129_s20 }
  0x4c   : > { %s1331_s26 = scalar_lea.vmem %s1598_s20, 256  ;;  %p1338_p1 = scmp.lt.s32.totalorder %s1598_s20, %s1336_s28 }
  0x4d   : > { %p1332_p12 = scmp.ne.s32.totalorder %s1598_s20, %s1331_s26  ;;  %p1339_p2 = scmp.lt.s32.totalorder %s1337_s29, %s1331_s26 }
  0x4f   : > { %p1333_p13 = pnand %p1332_p12, %p1476_p4  ;;  %p1340_p3 = por %p1339_p2, %p1338_p1 }
  0x51   : > { %p1334_p0 = pneg %p1333_p13 }
  0x53   : > { %p1341_p5 = pnand %p1340_p3, %p1334_p0 }
  0x8e   : > { %v612_v12 = vpop.permute.xlu0 %611  ;;  %v610_v13 = vpop.permute.xlu1 %609 }
  0x8f   : > { %v616_v18 = vsel %vm615_vm3, %v610_v13, %v612_v12 }
  0x92   : > { %v614_v14 = vpop.permute.xlu0 %613  ;;  %v709_v15 = vpop.permute.xlu1 %708 }
  0x93   : > { %v617_v16 = vsel %vm615_vm3, %v612_v12, %v614_v14 }
  0x94   : > { %623 = vmatprep.subr.mxu0 %v617_v16 }
  0x95   : > { %624 = vmatpush1.msra.mxu0 %v616_v18 }
  0x96   : > { %v711_v20 = vpop.permute.xlu0 %710  ;;  %v707_v21 = vpop.permute.xlu1 %706  ;;  %1229 = vmatmul.mubr.msk.f32.vlgmr.msra.gmra.mrb[0].mxu0 %vm213_vm2, %v1228_v17 }
  0x97   : > { %v714_v23 = vsel %vm712_vm4, %v709_v15, %v711_v20  ;;  %v713_v24 = vsel %vm712_vm4, %v707_v21, %v709_v15  ;;  %788 = vmatprep.mubr.f32.mxu0 %v1411_v2 }
  0x98   : > { %1231 = vmatprep.subr.msk.mxu0 %vm1522_vm5, %v714_v23 }
  0x99   : > { %1232 = vmatpush1.msk.msra.mxu0 %vm1527_vm6, %v713_v24 }
  0x9a   : > { %v303_v25 = vpop.permute.xlu1 %302  ;;  %v301_v26 = vpop.permute.xlu0 %300 }
  0x9b   : > { %v306_v27 = vsel %vm304_vm7, %v301_v26, %v303_v25 }
  0x9c   : > { %312 = vmatprep.subr.mxu1 %v306_v27 }
  0x9e   : > { %v812_v29 = vpop.permute.xlu1 %811  ;;  %v810_v30 = vpop.permute.xlu0 %809  ;;  %1233 = vmatmul.mubr.msk.f32.vlgmr.msra.gmra.mrb[0].mxu0 %vm213_vm2, %v1230_v28 }
  0x9f   : > { %v815_v31 = vsel %vm813_vm8, %v810_v30, %v812_v29  ;;  %889 = vmatprep.mubr.f32.mxu0 %v1411_v2 }
  0xa0   : > { %1235 = vmatprep.subr.msk.mxu0 %vm1506_vm1, %v815_v31 }
  0xa2   : > { %v808_v32 = vpop.permute.xlu1 %807  ;;  %v299_v33 = vpop.permute.xlu0 %298 }
  0xa3   : > { %v814_v35 = vsel %vm813_vm8, %v808_v32, %v810_v30  ;;  %v305_v36 = vsel %vm304_vm7, %v299_v33, %v301_v26 }
  0xa4   : > { %313 = vmatpush1.msra.mxu1 %v305_v36  ;;  %1236 = vmatpush1.msk.msra.mxu0 %vm1502_vm0, %v814_v35 }
  0xa5   : > { %1219 = vmatmul.mubr.msk.f32.vlgmr.msra.gmra.mrb[0].mxu1 %vm213_vm2, %v1218_v34 }
  0xa6   : > { %v410_v38 = vpop.permute.xlu1 %409  ;;  %v408_v39 = vpop.permute.xlu0 %407  ;;  %1237 = vmatmul.mubr.msk.f32.vlgmr.msra.gmra.mrb[0].mxu0 %vm213_vm2, %v1234_v37  ;;  %487 = vmatprep.mubr.f32.mxu1 %v1411_v2 }
  0xa7   : > { %v413_v40 = vsel %vm411_vm9, %v408_v39, %v410_v38  ;;  %988 = vmatprep.mubr.f32.mxu0 %v1411_v2 }
  0xa8   : > { %1221 = vmatprep.subr.msk.mxu1 %vm1522_vm5, %v413_v40 }
  0xaa   : > { %v915_v41 = vpop.permute.xlu1 %914  ;;  %v913_v42 = vpop.permute.xlu0 %912 }
  0xab   : > { %v918_v43 = vsel %vm916_vm10, %v913_v42, %v915_v41 }
  0xac   : > { %924 = vmatprep.subr.mxu0 %v918_v43 }
  0xae   : > { %v911_v44 = vpop.permute.xlu1 %910  ;;  %v406_v45 = vpop.permute.xlu0 %405 }
  0xaf   : > { %v917_v48 = vsel %vm916_vm10, %v911_v44, %v913_v42  ;;  %v412_v49 = vsel %vm411_vm9, %v406_v45, %v408_v39 }
  0xb0   : > { %1222 = vmatpush1.msk.msra.mxu1 %vm1527_vm6, %v412_v49  ;;  %925 = vmatpush1.msra.mxu0 %v917_v48 }
  0xb1   : > { %1223 = vmatmul.mubr.msk.f32.vlgmr.msra.gmra.mrb[0].mxu1 %vm213_vm2, %v1220_v46  ;;  %1239 = vmatmul.mubr.msk.f32.vlgmr.msra.gmra.mrb[0].mxu0 %vm213_vm2, %v1238_v47 }
  0xb2   : > { %v511_v50 = vpop.permute.xlu1 %510  ;;  %v509_v51 = vpop.permute.xlu0 %508  ;;  %588 = vmatprep.mubr.f32.mxu1 %v1411_v2  ;;  %1089 = vmatprep.mubr.f32.mxu0 %v1411_v2 }
  0xb3   : > { %v514_v52 = vsel %vm512_vm11, %v509_v51, %v511_v50 }
  0xb4   : > { %1225 = vmatprep.subr.msk.mxu1 %vm1506_vm1, %v514_v52 }
  0xb6   : > { %v1012_v53 = vpop.permute.xlu1 %1011  ;;  %v1010_v54 = vpop.permute.xlu0 %1009 }
  0xb7   : > { %v1015_v55 = vsel %vm1013_vm12, %v1010_v54, %v1012_v53 }
  0xb8   : > { %1241 = vmatprep.subr.msk.mxu0 %vm1522_vm5, %v1015_v55 }
  0xba   : > { %v1008_v56 = vpop.permute.xlu1 %1007  ;;  %v507_v57 = vpop.permute.xlu0 %506 }
  0xbb   : > { %v1014_v60 = vsel %vm1013_vm12, %v1008_v56, %v1010_v54  ;;  %v513_v61 = vsel %vm512_vm11, %v507_v57, %v509_v51 }
  0xbc   : > { %1226 = vmatpush1.msk.msra.mxu1 %vm1502_vm0, %v513_v61  ;;  %1242 = vmatpush1.msk.msra.mxu0 %vm1527_vm6, %v1014_v60 }
  0xbd   : > { %1227 = vmatmul.mubr.msk.f32.vlgmr.msra.gmra.mrb[0].mxu1 %vm213_vm2, %v1224_v58  ;;  %1243 = vmatmul.mubr.msk.f32.vlgmr.msra.gmra.mrb[0].mxu0 %vm213_vm2, %v1240_v59 }
 0x190   : > { %v590_v62 = vpop.f32.mrb[0].mxu1  ;;  %v1091_v63 = vpop.f32.mrb[0].mxu0 }
 0x191   : > { %v1250_v0 = vadd.f32 %v1091_v63, %v590_v62  ;;  %v592_v1 = vpop.f32.mrb[1].mxu1  ;;  %v1093_v2 = vpop.f32.mrb[1].mxu0 }
 0x192   : > { %v1251_v3 = vadd.f32 %v1093_v2, %v592_v1 }
 0x193   : > { %vm1104_vm13 = vcmp.ge.f32.partialorder %v1250_v0, 0.0  ;;  %v1106_v4 = vmul.f32 0.2, %v1250_v0 }
 0x194   : > { %vm1105_vm14 = vcmp.ge.f32.partialorder %v1251_v3, 0.0  ;;  %v1107_v5 = vmul.f32 0.2, %v1251_v3 }
 0x195   : > { %v1108_v6 = vsel %vm1104_vm13, %v1250_v0, %v1106_v4 }
 0x196   : > { %v1109_v7 = vsel %vm1105_vm14, %v1251_v3, %v1107_v5  ;;  %1110 = vst [vmem:[%s160_s18] sm:$0xff] %v1108_v6 }
 0x197   : > { %1111 = vst [vmem:[%s160_s18 + $0x8] sm:$0xff] %v1109_v7 }
 0x198   : > { %1344 = shalt.err (!%p1341_p5)
}
 0x199   : > { %s1345_s30 = scalar_lea.hbm %s1596_s25, 256  ;;  %s1349_s5 = scalar_lea.hbm %s1645_s2, 512 }
 0x19a   : > { %p1346_p6 = scmp.ne.s32.totalorder %s1596_s25, %s1345_s30  ;;  %p1350_p10 = scmp.lt.u32.totalorder %s1596_s25, %s1645_s2 }
 0x19b   : > { %p1351_p11 = scmp.lt.u32.totalorder %s1349_s5, %s1345_s30  ;;  %p1353_p13 = scmp.lt.u32.totalorder %s1345_s30, %s1596_s25 }
 0x19c   : > { %p1347_p7 = pnand %p1346_p6, %p1476_p4 }
 0x19d   : > { %p1352_p12 = por %p1351_p11, %p1350_p10 }
 0x19e   : > { %p1348_p9 = pneg %p1347_p7 }
 0x19f   : > { %p1354_p0 = por %p1353_p13, %p1352_p12 }
 0x1a1   : > { %p1355_p1 = pnand %p1354_p0, %p1348_p9 }
 0x1a3   : > { %1358 = shalt.err (!%p1355_p1)
}
 0x1a4   : > { %1267 = dma.vmem_to_hbm [thread:$0]  (%p1476_p4), %s1598_s20, 256, %s1596_s25, %s1113_s12  }
 0x1a5 PF: > { %p1273_p2 = scmp.ge.s32.totalorder %s1409_s14, 2  ;;  %s1141_s8 = sand.u32 1, %s1389_s9  }
 0x1a6   : > { %s1142_s15 = scalar_lea.sflag [#allocation4], %s1141_s8 }
 0x1a7   : > { %p1270_p3 = pnand %p1273_p2, %p1483_p8 }
 0x1a9   : > { %1384 = dma.done.wait (!%p1270_p3), %s1142_s15, 256  }
 0x1aa   : > { %1386 = vsyncadd (!%p1270_p3), %s1142_s15, 4294967040  ;;  %s15_s14 = sadd.s32 1, %s1409_s14   ;;  %s1656_s9 = smov %s1393_s10 }
 0x1ab   : > { %p12_p5 = scmp.ge.s32.totalorder %s15_s14, 4   ;;  %s1657_s10 = smov %s1397_s11 }
 0x1ac   : > { %s1658_s11 = smov %s1489_s22  ;;  %s1659_s12 = smov %s1405_s13 }
 0x1ad   : > { %s1660_s13 = smov %s1662_s17  ;;  %14 = sbr.rel (!%p12_p5) target bundleno = 4 (0x4), region = 71 }
 0x1b4   :  { %1147 = vsyncpa [#allocation4], 1 }
 0x1b5   :  { %1149 = vsyncpa [#allocation4 + $0x1], 1 }

</bundles_post_ra>
